<compile_context>
chip_gen: v7x
topology: tpu7x:2x2x1
jax: 0.10.0
libtpu: 0.0.40
codegen_flags: <defaults>
</compile_context>

<pallas_src>
import math
import functools

import jax
import jax.numpy as jnp
from jax import lax
from jax.experimental import pallas as pl
from jax.experimental.pallas import tpu as pltpu

S_SCALE = 8.0
M_MARGIN = 0.5
SIN_M = math.sin(M_MARGIN)
COS_M = math.cos(M_MARGIN)


def _round_up(v, m):
    return ((v + m - 1) // m) * m


def _vmem_capacity_bytes():
    try:
        return int(pltpu.get_tpu_info().vmem_capacity_bytes)
    except Exception:
        return 64 * 1024 * 1024  # conservative (v7x per-core VMEM)


def _choose_tile_n(cout, cin_p, tm, x_rows, budget):
    """Largest lane-aligned class tile that fits the VMEM budget while
    minimizing padded classes (Cp - cout)."""
    full = _round_up(cout, 128)
    cands = sorted({min(c, full) for c in range(128, 1025, 128)}, reverse=True)
    best = None
    for tn in cands:
        per_buf = (x_rows * cin_p + tn * cin_p + tm * tn + tn + 2 * x_rows) * 4
        if 2 * per_buf > budget:
            continue
        cp = _round_up(cout, tn)
        if best is None or cp < best[1]:
            best = (tn, cp)
    return best[0] if best is not None else 128


def _arcface_label_kernel(x_ref, w_ref, winv_ref, xinv_ref, label_ref, o_ref,
                          *, tm, tn, x_resident, cos_m, sin_m, scale):
    j = pl.program_id(0)                        # class tile (outer / slow)
    if x_resident:
        row0 = pl.multiple_of(pl.program_id(1) * tm, 8)
        x = x_ref[pl.ds(row0, tm), :]           # [TM, CIN]
        x_inv = xinv_ref[pl.ds(row0, tm), :]    # [TM, 1]
        lbl = label_ref[pl.ds(row0, tm), :]     # [TM, 1]
    else:
        x = x_ref[...]
        x_inv = xinv_ref[...]
        lbl = label_ref[...]

    # fc(x) = x @ W.T  (contract dim 1 of both operands) -> MXU, f32 acc
    logits = lax.dot_general(
        x, w_ref[...], (((1,), (1,)), ((), ())),
        preferred_element_type=jnp.float32)     # [TM, TN]
    cos = logits * x_inv * winv_ref[...]        # [TM, TN]

    # one-hot select for this class tile
    classes = lax.broadcasted_iota(jnp.int32, cos.shape, 1) + j * tn
    hit = classes == lbl                        # [TM, TN] bool

    sin = jnp.sqrt(jnp.maximum(1.0 - cos * cos, 0.0))
    angle_sum = cos * cos_m - sin * sin_m
    o_ref[...] = jnp.where(hit, angle_sum, cos) * scale


def _arcface_nolabel_kernel(x_ref, w_ref, winv_ref, xinv_ref, o_ref,
                            *, tm, x_resident):
    if x_resident:
        row0 = pl.multiple_of(pl.program_id(1) * tm, 8)
        x = x_ref[pl.ds(row0, tm), :]
        x_inv = xinv_ref[pl.ds(row0, tm), :]
    else:
        x = x_ref[...]
        x_inv = xinv_ref[...]
    logits = lax.dot_general(
        x, w_ref[...], (((1,), (1,)), ((), ())),
        preferred_element_type=jnp.float32)
    o_ref[...] = logits * x_inv * winv_ref[...]


def arcface_forward(x, weight, label=None, *, s=S_SCALE, m=M_MARGIN,
                    tile_m=None, tile_n=None,
                    max_resident_x_bytes=6 * 1024 * 1024):
    """x: [B, Cin] f32, weight: [Cout, Cin] f32 (nn.Linear layout),
    label: optional [B] int.  Returns [B, Cout] f32 (matches torch module)."""
    x = x.astype(jnp.float32)
    weight = weight.astype(jnp.float32)
    B, cin = x.shape
    cout, _ = weight.shape

    # ---- tile selection (class axis is the big one; batch/Cin are small) ----
    if tile_m is None:
        TM = min(256, _round_up(B, 8))
    else:
        assert tile_m % 8 == 0, "tile_m must be a multiple of 8"
        TM = tile_m
    CIN = _round_up(cin, 128)
    Bp = _round_up(B, TM)

    # keep x / x_inv / label fully VMEM-resident when small -> streamed once
    x_resident = (Bp * CIN * 4) <= max_resident_x_bytes
    x_rows = Bp if x_resident else TM

    vmem_cap = _vmem_capacity_bytes()
    if tile_n is None:
        TN = _choose_tile_n(cout, CIN, TM, x_rows, int(vmem_cap * 0.7))
    else:
        assert tile_n % 128 == 0, "tile_n must be a multiple of 128"
        TN = tile_n
    Cp = _round_up(cout, TN)

    # ---- pad operands so every block is (8,128)-aligned ----
    xp = x if (Bp == B and CIN == cin) else jnp.pad(
        x, ((0, Bp - B), (0, CIN - cin)))
    wp = weight if (Cp == cout and CIN == cin) else jnp.pad(
        weight, ((0, Cp - cout), (0, CIN - cin)))

    # tiny per-row / per-class inverse L2 norms, computed once in plain JAX
    # (padded zero rows/cols -> inv = 0, so padding stays finite & neutral)
    x_sq = jnp.sum(xp * xp, axis=1, keepdims=True)            # [Bp, 1]
    x_inv = jnp.where(x_sq > 0.0, lax.rsqrt(x_sq), 0.0).astype(jnp.float32)
    w_sq = jnp.sum(wp * wp, axis=1, keepdims=True).T          # [1, Cp]
    w_inv = jnp.where(w_sq > 0.0, lax.rsqrt(w_sq), 0.0).astype(jnp.float32)

    # ---- grid: class axis OUTER (slow), batch axis INNER (fast) ----
    # -> weight block index constant over the inner sweep: W streamed once.
    grid = (Cp // TN, Bp // TM)
    w_spec = pl.BlockSpec((TN, CIN), lambda j, i: (j, 0))
    winv_spec = pl.BlockSpec((1, TN), lambda j, i: (0, j))
    out_spec = pl.BlockSpec((TM, TN), lambda j, i: (i, j))
    if x_resident:
        x_spec = pl.BlockSpec((Bp, CIN), lambda j, i: (0, 0))
        xinv_spec = pl.BlockSpec((Bp, 1), lambda j, i: (0, 0))
        lbl_spec = pl.BlockSpec((Bp, 1), lambda j, i: (0, 0))
    else:
        x_spec = pl.BlockSpec((TM, CIN), lambda j, i: (i, 0))
        xinv_spec = pl.BlockSpec((TM, 1), lambda j, i: (i, 0))
        lbl_spec = pl.BlockSpec((TM, 1), lambda j, i: (i, 0))

    # ---- VMEM limit derived from actual (double-buffered) tile bytes ----
    per_buf = (x_rows * CIN + TN * CIN + TM * TN + TN + 2 * x_rows) * 4
    vmem_limit = min(max(2 * per_buf + (4 << 20), 32 << 20),
                     int(vmem_cap * 0.9))
    compiler_params = pltpu.CompilerParams(
        dimension_semantics=("parallel", "parallel"),
        vmem_limit_bytes=vmem_limit,
    )
    cost = pl.CostEstimate(
        flops=2 * Bp * Cp * CIN,
        transcendentals=(Bp * Cp if label is not None else 0),
        bytes_accessed=4 * (Bp * CIN + Cp * CIN + Bp * Cp + Cp + 2 * Bp),
    )

    out_shape = jax.ShapeDtypeStruct((Bp, Cp), jnp.float32)

    if label is None:
        kernel = functools.partial(
            _arcface_nolabel_kernel, tm=TM, x_resident=x_resident)
        out = pl.pallas_call(
            kernel,
            out_shape=out_shape,
            grid_spec=pltpu.PrefetchScalarGridSpec(
                num_scalar_prefetch=0,
                grid=grid,
                in_specs=[x_spec, w_spec, winv_spec, xinv_spec],
                out_specs=out_spec,
            ),
            compiler_params=compiler_params,
            cost_estimate=cost,
        )(xp, wp, w_inv, x_inv)
        return out[:B, :cout]

    label2d = label.astype(jnp.int32).reshape(B, 1)
    if Bp != B:
        # pad with -1 so padded rows never match a real class
        label2d = jnp.pad(label2d, ((0, Bp - B), (0, 0)), constant_values=-1)

    kernel = functools.partial(
        _arcface_label_kernel, tm=TM, tn=TN, x_resident=x_resident,
        cos_m=float(math.cos(m)), sin_m=float(math.sin(m)), scale=float(s))
    out = pl.pallas_call(
        kernel,
        out_shape=out_shape,
        grid_spec=pltpu.PrefetchScalarGridSpec(
            num_scalar_prefetch=0,
            grid=grid,
            in_specs=[x_spec, w_spec, winv_spec, xinv_spec, lbl_spec],
            out_specs=out_spec,
        ),
        compiler_params=compiler_params,
        cost_estimate=cost,
    )(xp, wp, w_inv, x_inv, label2d)
    return out[:B, :cout]


def _reference(x, weight, label=None, s=S_SCALE, m=M_MARGIN):
    """Pure-JAX reference matching the torch module's math."""
    logits = x @ weight.T
    x_l2 = jnp.linalg.norm(x, axis=1, keepdims=True)
    w_l2 = jnp.linalg.norm(weight, axis=1, keepdims=True).T
    cos = logits / (x_l2 * w_l2)
    if label is None:
        return cos
    one_hot = jax.nn.one_hot(label, weight.shape[0], dtype=cos.dtype)
    sin = jnp.sqrt(jnp.maximum(1.0 - cos ** 2, 0.0))
    angle_sum = cos * math.cos(m) - sin * math.sin(m)
    return (angle_sum * one_hot + cos * (1.0 - one_hot)) * s


if __name__ == "__main__":
    key = jax.random.PRNGKey(0)
    k_x, k_w, k_l, k_x2, k_w2, k_l2 = jax.random.split(key, 6)

    # --- small shapes consistent with the module (B=8, Cin=32, Cout=16) ---
    B, cin, cout = 8, 32, 16
    x = jax.random.normal(k_x, (B, cin), dtype=jnp.float32)
    weight = jax.random.normal(k_w, (cout, cin), dtype=jnp.float32) * (1.0 / math.sqrt(cin))
    label = jax.random.randint(k_l, (B,), 0, cout, dtype=jnp.int32)

    ref = _reference(x, weight, label)
    ref_nl = _reference(x, weight, None)

    out = arcface_forward(x, weight, label)                            # resident-x path
    jax.block_until_ready(out)
    assert jnp.allclose(out, ref, atol=5e-4, rtol=5e-4), "label/resident mismatch"

    out_t = arcface_forward(x, weight, label, max_resident_x_bytes=0)  # tiled-x path
    jax.block_until_ready(out_t)
    assert jnp.allclose(out_t, ref, atol=5e-4, rtol=5e-4), "label/tiled mismatch"

    out_nl = arcface_forward(x, weight, None)                          # no-label path
    jax.block_until_ready(out_nl)
    assert jnp.allclose(out_nl, ref_nl, atol=5e-4, rtol=5e-4), "no-label mismatch"

    # --- multi-tile / padded case: exercises grid reorder, in-kernel batch
    #     slicing, class padding and label=-1 padding ---
    B2, cin2, cout2 = 24, 72, 300
    x2 = jax.random.normal(k_x2, (B2, cin2), dtype=jnp.float32)
    w2 = jax.random.normal(k_w2, (cout2, cin2), dtype=jnp.float32) * (1.0 / math.sqrt(cin2))
    l2 = jax.random.randint(k_l2, (B2,), 0, cout2, dtype=jnp.int32)
    ref2 = _reference(x2, w2, l2)

    out2 = arcface_forward(x2, w2, l2, tile_m=8, tile_n=128)
    jax.block_until_ready(out2)
    assert jnp.allclose(out2, ref2, atol=5e-4, rtol=5e-4), "multi-tile mismatch"

    out2_t = arcface_forward(x2, w2, l2, tile_m=8, tile_n=128, max_resident_x_bytes=0)
    jax.block_until_ready(out2_t)
    assert jnp.allclose(out2_t, ref2, atol=5e-4, rtol=5e-4), "multi-tile/tiled mismatch"

    print("KERNEL_OK")
</pallas_src>

<mosaic_0001>
module attributes {stable_mosaic.version = 11 : i64} {
  func.func @_arcface_label_kernel(%arg0: i32, %arg1: i32, %arg2: memref<8x128xf32, #tpu.memory_space<vmem>>, %arg3: memref<128x128xf32, #tpu.memory_space<vmem>>, %arg4: memref<1x128xf32, #tpu.memory_space<vmem>>, %arg5: memref<8x1xf32, #tpu.memory_space<vmem>>, %arg6: memref<8x1xi32, #tpu.memory_space<vmem>>, %arg7: memref<8x128xf32, #tpu.memory_space<vmem>>) attributes {dimension_semantics = [#tpu.dimension_semantics<parallel>, #tpu.dimension_semantics<parallel>], iteration_bounds = array<i64: 1, 1>, scalar_prefetch = 0 : i64, scratch_operands = 0 : i64, tpu.core_type = #tpu.core_type<tc>, window_params = [{pipeline_mode = #tpu.pipeline_mode<synchronous>, transform_indices = @transform_0, window_bounds = array<i64: 8, 128>}, {transform_indices = @transform_1, window_bounds = array<i64: 128, 128>}, {transform_indices = @transform_2, window_bounds = array<i64: 1, 128>}, {pipeline_mode = #tpu.pipeline_mode<synchronous>, transform_indices = @transform_3, window_bounds = array<i64: 8, 1>}, {pipeline_mode = #tpu.pipeline_mode<synchronous>, transform_indices = @transform_4, window_bounds = array<i64: 8, 1>}, {transform_indices = @transform_5, window_bounds = array<i64: 8, 128>}]} {
    %c8_i32 = arith.constant 8 : i32
    %0 = arith.muli %arg1, %c8_i32 : i32
    %1 = tpu.assume_multiple %0, 8 : i32
    %2 = arith.index_cast %1 : i32 to index
    %c0 = arith.constant 0 : index
    %3 = vector.load %arg2[%2, %c0] : memref<8x128xf32, #tpu.memory_space<vmem>>, vector<8x128xf32>
    %4 = arith.index_cast %1 : i32 to index
    %c0_0 = arith.constant 0 : index
    %5 = vector.load %arg5[%4, %c0_0] : memref<8x1xf32, #tpu.memory_space<vmem>>, vector<8x1xf32>
    %6 = arith.index_cast %1 : i32 to index
    %c0_1 = arith.constant 0 : index
    %7 = vector.load %arg6[%6, %c0_1] : memref<8x1xi32, #tpu.memory_space<vmem>>, vector<8x1xi32>
    %c0_2 = arith.constant 0 : index
    %c0_3 = arith.constant 0 : index
    %8 = vector.load %arg3[%c0_2, %c0_3] : memref<128x128xf32, #tpu.memory_space<vmem>>, vector<128x128xf32>
    %cst = arith.constant dense<0.000000e+00> : vector<8x128xf32>
    %9 = tpu.matmul %3, %8, %cst {dimension_numbers = #tpu.dot_dimension_numbers<[1], [1], [0], [0], [0, 0, 1, 0], [], []>} : vector<8x128xf32>, vector<128x128xf32>, vector<8x128xf32> -> vector<8x128xf32>
    %10 = vector.broadcast %5 : vector<8x1xf32> to vector<8x128xf32>
    %11 = arith.mulf %9, %10 : vector<8x128xf32>
    %c0_4 = arith.constant 0 : index
    %c0_5 = arith.constant 0 : index
    %12 = vector.load %arg4[%c0_4, %c0_5] : memref<1x128xf32, #tpu.memory_space<vmem>>, vector<1x128xf32>
    %13 = vector.broadcast %12 : vector<1x128xf32> to vector<8x128xf32>
    %14 = arith.mulf %11, %13 : vector<8x128xf32>
    %15 = tpu.iota {dimensions = array<i32: 1>} : vector<8x128xi32>
    %c128_i32 = arith.constant 128 : i32
    %16 = arith.muli %arg0, %c128_i32 : i32
    %17 = vector.broadcast %16 : i32 to vector<8x128xi32>
    %18 = arith.addi %15, %17 : vector<8x128xi32>
    %19 = vector.broadcast %7 : vector<8x1xi32> to vector<8x128xi32>
    %20 = arith.cmpi eq, %18, %19 : vector<8x128xi32>
    %21 = arith.mulf %14, %14 : vector<8x128xf32>
    %cst_6 = arith.constant 1.000000e+00 : f32
    %22 = vector.broadcast %cst_6 : f32 to vector<8x128xf32>
    %23 = arith.subf %22, %21 : vector<8x128xf32>
    %cst_7 = arith.constant 0.000000e+00 : f32
    %24 = vector.broadcast %cst_7 : f32 to vector<8x128xf32>
    %25 = arith.maximumf %23, %24 : vector<8x128xf32>
    %26 = math.sqrt %25 : vector<8x128xf32>
    %cst_8 = arith.constant 0.87758255 : f32
    %27 = vector.broadcast %cst_8 : f32 to vector<8x128xf32>
    %28 = arith.mulf %14, %27 : vector<8x128xf32>
    %cst_9 = arith.constant 0.47942555 : f32
    %29 = vector.broadcast %cst_9 : f32 to vector<8x128xf32>
    %30 = arith.mulf %26, %29 : vector<8x128xf32>
    %31 = arith.subf %28, %30 : vector<8x128xf32>
    %32 = arith.select %20, %31, %14 : vector<8x128xi1>, vector<8x128xf32>
    %cst_10 = arith.constant 8.000000e+00 : f32
    %33 = vector.broadcast %cst_10 : f32 to vector<8x128xf32>
    %34 = arith.mulf %32, %33 : vector<8x128xf32>
    %c0_11 = arith.constant 0 : index
    %c0_12 = arith.constant 0 : index
    %35 = vector.load %arg7[%c0_11, %c0_12] : memref<8x128xf32, #tpu.memory_space<vmem>>, vector<8x128xf32>
    tpu.vector_store %arg7[%c0_11, %c0_12], %34 {strides = array<i32>} : memref<8x128xf32, #tpu.memory_space<vmem>>, vector<8x128xf32>,
    return
  }
  func.func @transform_0(%arg0: i32, %arg1: i32) -> (i32, i32) {
    %c0_i32 = arith.constant 0 : i32
    %c0_i32_0 = arith.constant 0 : i32
    %c0_i32_1 = arith.constant 0 : i32
    return %c0_i32, %c0_i32_0 : i32, i32
  }
  func.func @transform_1(%arg0: i32, %arg1: i32) -> (i32, i32) {
    %c0_i32 = arith.constant 0 : i32
    %c0_i32_0 = arith.constant 0 : i32
    return %arg0, %c0_i32 : i32, i32
  }
  func.func @transform_2(%arg0: i32, %arg1: i32) -> (i32, i32) {
    %c0_i32 = arith.constant 0 : i32
    %c0_i32_0 = arith.constant 0 : i32
    return %c0_i32, %arg0 : i32, i32
  }
  func.func @transform_3(%arg0: i32, %arg1: i32) -> (i32, i32) {
    %c0_i32 = arith.constant 0 : i32
    %c0_i32_0 = arith.constant 0 : i32
    %c0_i32_1 = arith.constant 0 : i32
    return %c0_i32, %c0_i32_0 : i32, i32
  }
  func.func @transform_4(%arg0: i32, %arg1: i32) -> (i32, i32) {
    %c0_i32 = arith.constant 0 : i32
    %c0_i32_0 = arith.constant 0 : i32
    %c0_i32_1 = arith.constant 0 : i32
    return %c0_i32, %c0_i32_0 : i32, i32
  }
  func.func @transform_5(%arg0: i32, %arg1: i32) -> (i32, i32) {
    %c0_i32 = arith.constant 0 : i32
    return %arg1, %arg0 : i32, i32
  }
}

</mosaic_0001>

<bundles_post_ra>
// kernel: tpu_custom_call.1
= control target key start
LH: loop header
LB: loop body
LE: loop exit
PB: predicated region body
PF: predicated region fallthrough
CT: control target
= control target key end

     0   :  { %10 = vsyncpa [#allocation3], 0  ;;  %s392_s0 = inlined_call_operand.vmem [shape: f32[8,128], index: 0, kind: input, shape index: {}]   ;;  %s393_s1 = inlined_call_operand.hbm [shape: f32[128,128], index: 1, kind: input, shape index: {}]   ;;  %s394_s2 = inlined_call_operand.vmem [shape: f32[1,128], index: 2, kind: input, shape index: {}]   ;;  %s395_s3 = inlined_call_operand.vmem [shape: f32[8,1], index: 3, kind: input, shape index: {}]   ;;  %s396_s4 = inlined_call_operand.vmem [shape: s32[8,1], index: 4, kind: input, shape index: {}]   ;;  %s397_s5 = inlined_call_operand.hbm [shape: f32[8,128], index: 5, kind: output, shape index: {}]  }
   0x1   :  { %11 = vsyncpa [#allocation4], 0  ;;  %s318_s18 = smov [#allocation2]   ;;  %s270_s22 = scalar_lea.hbm %s393_s1, 2048 }
   0x2   :  { %s19_s19 = sshll.u32 %s318_s18, 4  ;;  %p271_p0 = scmp.ne.s32.totalorder %s393_s1, %s270_s22  ;;  %s20_s19 = int_to_ptr.vmem [resolvable:$true] %s19_s19 }
   0x3   :  { %p274_p1 = scmp.lt.u32.totalorder %s270_s22, %s393_s1 }
   0x5   :  { %p276_p2 = pnand %p274_p1, %p271_p0 }
   0x7   :  { %279 = shalt.err (!%p276_p2)
}
   0x8   :  { %s280_s27 = scalar_lea.vmem %s20_s19, 2048  ;;  %p285_p4 = scmp.lt.s32.totalorder %s20_s19, %s20_s19 }
   0x9   :  { %p281_p3 = scmp.ne.s32.totalorder %s20_s19, %s280_s27  ;;  %p286_p5 = scmp.lt.s32.totalorder %s280_s27, %s280_s27 }
   0xb   :  { %p287_p6 = por %p286_p5, %p285_p4 }
   0xd   :  { %p288_p7 = pnand %p287_p6, %p281_p3 }
   0xf   :  { %291 = shalt.err (!%p288_p7)
}
  0x10   :  { %s319_s28 = smov 128   ;;  %s320_s29 = smov 8  }
  0x11   :  { %25 = dma.hbm_to_vmem [thread:$0]  %s393_s1, 2048, %s20_s19, [#allocation3], %s319_s28, %s319_s28, %s320_s29  }
  0x12   :  { %314 = dma.done.wait [#allocation3], 2048  }
  0x13   :  { %315 = vsyncadd [#allocation3], 4294965248  ;;  %v321_v0 = vmov 0.0|0.0   ;;  %vm322_vm0 = vmmov 0   ;;  %v323_v1 = vmov 0.0   ;;  %v324_v2 = vmov 0  }
  0x14   :  { %235 = vmatprep.subr.bf16.mxu0 %v321_v0  ;;  %232 = vmatprep.mubr.msk.f32.mxu0 %vm322_vm0, %v323_v1  ;;  %v42_v3 = vld [vmem:[#allocation2] sm:$0xff]  ;;  %v43_v4 = vld [vmem:[#allocation2 + $0x8] sm:$0xff]  ;;  %v44_v6 = vld [vmem:[#allocation2 + $0x10] sm:$0xff]  ;;  %v142_v40 = vlaneseq }
  0x15   :  { %267 = vset.pattern.permute.xlu0 %v324_v2  ;;  %v236_v5 = vpack.c.bf16 %v43_v4, %v42_v3  ;;  %v45_v7 = vld [vmem:[#allocation2 + $0x18] sm:$0xff]  ;;  %v39_v8 = vld [vmem:[%s395_s3] sm:$0xff]  ;;  %v47_v12 = vld [vmem:[#allocation2 + $0x28] sm:$0xff] }
  0x16   :  { %130 = vperm.xlu0 %267, %v39_v8   ;;  %v239_v9 = vpack.c.bf16 %v45_v7, %v44_v6  ;;  %v41_v10 = vld [vmem:[%s396_s4] sm:$0xff]  ;;  %v48_v14 = vld [vmem:[#allocation2 + $0x30] sm:$0xff]  ;;  %v49_v15 = vld [vmem:[#allocation2 + $0x38] sm:$0xff]  ;;  %v143_v44 = vand.u32 127, %v142_v40 }
  0x17   :  { %237 = vmatpush3.bf16.xpose.msra.mxu0 %v236_v5  ;;  %v46_v11 = vld [vmem:[#allocation2 + $0x20] sm:$0xff]  ;;  %v245_v16 = vpack.c.bf16 %v49_v15, %v48_v14  ;;  %v51_v18 = vld [vmem:[#allocation2 + $0x48] sm:$0xff]  ;;  %v52_v20 = vld [vmem:[#allocation2 + $0x50] sm:$0xff] }
  0x18   :  { %238 = vmatprep.subr.bf16.mxu0 %v321_v0  ;;  %v242_v13 = vpack.c.bf16 %v47_v12, %v46_v11  ;;  %v50_v17 = vld [vmem:[#allocation2 + $0x40] sm:$0xff]  ;;  %v53_v21 = vld [vmem:[#allocation2 + $0x58] sm:$0xff]  ;;  %v55_v24 = vld [vmem:[#allocation2 + $0x68] sm:$0xff] }
  0x19   :  { %v248_v19 = vpack.c.bf16 %v51_v18, %v50_v17  ;;  %v251_v22 = vpack.c.bf16 %v53_v21, %v52_v20  ;;  %v54_v23 = vld [vmem:[#allocation2 + $0x60] sm:$0xff]  ;;  %v56_v26 = vld [vmem:[#allocation2 + $0x70] sm:$0xff]  ;;  %v57_v27 = vld [vmem:[#allocation2 + $0x78] sm:$0xff] }
  0x1a   :  { %148 = vperm.xlu0 %267, %v41_v10   ;;  %v254_v25 = vpack.c.bf16 %v55_v24, %v54_v23  ;;  %v257_v28 = vpack.c.bf16 %v57_v27, %v56_v26  ;;  %v37_v29 = vld [vmem:[%s392_s0] sm:$0xff]  ;;  %s325_s0 = smov [#allocation5]  }
  0x1b   :  { %v182_v32 = vld [vmem:[%s394_s2] ss:$0 sm:$0xff]  ;;  %s173_s2 = sshll.u32 %s325_s0, 4  ;;  %s174_s2 = int_to_ptr.vmem [resolvable:$true] %s173_s2 }
  0x1c   :  { %s292_s12 = scalar_lea.vmem %s174_s2, 128  ;;  %p297_p9 = scmp.lt.s32.totalorder %s174_s2, %s174_s2 }
  0x1d   :  { %p293_p8 = scmp.ne.s32.totalorder %s174_s2, %s292_s12  ;;  %p298_p10 = scmp.lt.s32.totalorder %s292_s12, %s292_s12 }
  0x1f   :  { %240 = vmatpush3.bf16.xpose.msra.mxu0 %v239_v9  ;;  %p299_p11 = por %p298_p10, %p297_p9 }
  0x20   :  { %241 = vmatprep.subr.bf16.mxu0 %v321_v0 }
  0x21   :  { %p300_p12 = pnand %p299_p11, %p293_p8 }
  0x27   :  { %243 = vmatpush3.bf16.xpose.msra.mxu0 %v242_v13 }
  0x28   :  { %244 = vmatprep.subr.bf16.mxu0 %v321_v0 }
  0x2f   :  { %246 = vmatpush3.bf16.xpose.msra.mxu0 %v245_v16 }
  0x30   :  { %247 = vmatprep.subr.bf16.mxu0 %v321_v0 }
  0x37   :  { %249 = vmatpush3.bf16.xpose.msra.mxu0 %v248_v19 }
  0x38   :  { %250 = vmatprep.subr.bf16.mxu0 %v321_v0 }
  0x3f   :  { %252 = vmatpush3.bf16.xpose.msra.mxu0 %v251_v22 }
  0x40   :  { %253 = vmatprep.subr.bf16.mxu0 %v321_v0 }
  0x47   :  { %255 = vmatpush3.bf16.xpose.msra.mxu0 %v254_v25 }
  0x48   :  { %256 = vmatprep.subr.bf16.mxu0 %v321_v0 }
  0x4f   :  { %258 = vmatpush3.bf16.xpose.msra.mxu0 %v257_v28 }
  0x56   :  { %233 = vmatmul.mubr.f32.vlgmr.msra.gmra.mrb[0].mxu0 %v37_v29 }
  0x95   :  { %v131_v30 = vpop.permute.xlu0 %130 }
  0x99   :  { %v149_v46 = vpop.permute.xlu0 %148 }
  0x9a   :  { %vm150_vm3 = vcmp.eq.s32.totalorder %v143_v44, %v149_v46 }
 0x129   :  { %v124_v31 = vpop.f32.mrb[0].mxu0 }
 0x12a   :  { %v133_v33 = vmul.f32 %v131_v30, %v124_v31  ;;  %v234_v34 = vpop.f32.mrb[1].mxu0 }
 0x12c   :  { %v141_v35 = vmul.f32 %v182_v32, %v133_v33 }
 0x12e   :  { %v151_v36 = vmul.f32 %v141_v35, %v141_v35  ;;  %v161_v47 = vmul.f32 0.87758255, %v141_v35 }
 0x130   :  { %v152_v37 = vsub.f32 1.0, %v151_v36 }
 0x132   :  { %v153_v38 = vmax.f32 %v152_v37, 0.0 }
 0x134   :  { %268 = vrsqrt.f32 %v153_v38  ;;  %vm156_vm1 = vcmp.eq.f32.partialorder %v153_v38, inf  ;;  %v159_v42 = vand.u32 2147483648, %v153_v38  ;;  %vm158_vm2 = vcmp.eq.f32.partialorder %v153_v38, 0.0 }
 0x13e   :  { %v269_v39 = vpop.eup %268 }
 0x13f   :  { %v155_v41 = vmul.f32 %v269_v39, %v153_v38 }
 0x141   :  { %v157_v43 = vsel %vm156_vm1, %v153_v38, %v155_v41 }
 0x142   :  { %v160_v45 = vsel %vm158_vm2, %v159_v42, %v157_v43 }
 0x143   :  { %v162_v48 = vmul.f32 0.47942555, %v160_v45 }
 0x145   :  { %v163_v49 = vsub.f32 %v161_v47, %v162_v48 }
 0x147   :  { %v164_v50 = vsel %vm150_vm3, %v163_v49, %v141_v35 }
 0x148   :  { %v165_v51 = vmul.f32 8.0, %v164_v50 }
 0x14a   :  { %166 = vst [vmem:[#allocation5] sm:$0xff] %v165_v51 }
 0x14b   :  { %303 = shalt.err (!%p300_p12)
}
 0x14c   :  { %s304_s15 = scalar_lea.hbm %s397_s5, 128 }
 0x14d   :  { %p305_p13 = scmp.ne.s32.totalorder %s397_s5, %s304_s15  ;;  %p308_p0 = scmp.lt.u32.totalorder %s304_s15, %s397_s5 }
 0x14f   :  { %p310_p1 = pnand %p308_p0, %p305_p13 }
 0x151   :  { %313 = shalt.err (!%p310_p1)
}
 0x152   :  { %176 = dma.vmem_to_hbm [thread:$0]  %s174_s2, 128, %s397_s5, [#allocation4]  }
 0x153   :  { %316 = dma.done.wait [#allocation4], 128  }
 0x154   :  { %317 = vsyncadd [#allocation4], 4294967168 }
 0x155   :  { %180 = vsyncpa [#allocation3], 1 }
 0x156   :  { %181 = vsyncpa [#allocation4], 1 }

</bundles_post_ra>
